<compile_context>
chip_gen: v7x
topology: tpu7x:2x2x1
jax: 0.10.0
libtpu: 0.0.40
codegen_flags: <defaults>
</compile_context>

<pallas_src>
import jax
import jax.numpy as jnp
from jax.experimental import pallas as pl
from jax.experimental.pallas import tpu as pltpu


_TARGET_CHUNK_BYTES = 8 * 1024 * 1024  # ~8 MiB per DMA chunk (no VMEM involved)


def identity_forward(x, force_materialize=False):
    """Identity forward pass: y = x.

    Default: return x (no kernel, no HBM traffic — the only correct
    "optimization" for Identity).

    force_materialize=True: produce a distinct output buffer via a chunked
    HBM->HBM DMA Pallas kernel (no VMEM staging).  Note this still costs the
    full 2*size bytes of HBM traffic; there is no "free" materialized copy.
    """
    if not force_materialize:
        return x

    orig_shape = x.shape
    total = int(x.size)
    itemsize = jnp.dtype(x.dtype).itemsize

    # Lane-dense 2-D view (last dim a multiple of 128) for clean DMA shapes.
    cols = 0
    for c in (2048, 1024, 512, 256, 128):
        if total > 0 and total % c == 0:
            cols = c
            break
    if cols == 0:
        # No clean lane-dense view (or empty input): Identity is a no-op,
        # returning x is the semantically correct and fastest choice.
        return x

    rows = total // cols
    x2d = x.reshape(rows, cols)  # metadata-only for contiguous inputs

    # Pick a chunk (in rows) that divides `rows` exactly so every grid step
    # issues a full, unmasked DMA; ~8 MiB chunks amortize the per-step
    # overhead, and a >1-length "parallel" grid shards across v7x's 2 TCs.
    target_rows = max(1, _TARGET_CHUNK_BYTES // (cols * itemsize))
    if rows <= target_rows:
        block_rows = rows
    else:
        block_rows = 1
        for d in range(min(rows, target_rows), 0, -1):
            if rows % d == 0:
                block_rows = d
                break

    grid = (rows // block_rows,)

    def _identity_copy_kernel(x_hbm, o_hbm, sem):
        # Direct HBM -> HBM DMA of this grid step's row chunk.  No VMEM
        # staging, no vector load/store work on the TensorCore.
        i = pl.program_id(0)
        start = pl.multiple_of(i * block_rows, block_rows)
        cp = pltpu.make_async_copy(
            x_hbm.at[pl.ds(start, block_rows), :],
            o_hbm.at[pl.ds(start, block_rows), :],
            sem,
        )
        cp.start()
        cp.wait()

    out = pl.pallas_call(
        _identity_copy_kernel,
        out_shape=jax.ShapeDtypeStruct((rows, cols), x.dtype),
        grid=grid,
        in_specs=[pl.BlockSpec(memory_space=pl.ANY)],   # stay in HBM
        out_specs=pl.BlockSpec(memory_space=pl.ANY),    # stay in HBM
        scratch_shapes=[pltpu.SemaphoreType.DMA(())],
        compiler_params=pltpu.CompilerParams(
            dimension_semantics=("parallel",),
        ),
        cost_estimate=pl.CostEstimate(
            flops=0,
            transcendentals=0,
            bytes_accessed=2 * total * itemsize,
        ),
    )(x2d)

    return out.reshape(orig_shape)


if __name__ == "__main__":
    key = jax.random.PRNGKey(0)
    # Identity.__init__ takes in_channels but defines no parameters.
    x = jax.random.normal(key, (2, 4, 16, 16), dtype=jnp.float32)

    # Default path: no kernel at all, y is x.
    y_fast = identity_forward(x)
    y_fast = jax.block_until_ready(y_fast)
    assert y_fast.shape == x.shape and y_fast.dtype == x.dtype
    assert bool(jnp.allclose(y_fast, x)), "Identity fast-path output mismatch"

    # Materializing path: exercise the Pallas HBM->HBM DMA kernel once.
    y_mat = identity_forward(x, force_materialize=True)
    y_mat = jax.block_until_ready(y_mat)
    assert y_mat.shape == x.shape and y_mat.dtype == x.dtype
    assert bool(jnp.allclose(y_mat, x)), "Identity kernel output mismatch"

    print("KERNEL_OK")
</pallas_src>

<mosaic_0001>
module attributes {stable_mosaic.version = 11 : i64} {
  func.func @_identity_copy_kernel(%arg0: i32, %arg1: memref<1x2048xf32, #tpu.memory_space<any>>, %arg2: memref<1x2048xf32, #tpu.memory_space<any>>, %arg3: memref<!tpu.dma_semaphore, #tpu.memory_space<semaphore_mem>>) attributes {dimension_semantics = [#tpu.dimension_semantics<parallel>], iteration_bounds = array<i64: 1>, scalar_prefetch = 0 : i64, scratch_operands = 1 : i64, tpu.core_type = #tpu.core_type<tc>, window_params = [{}, {}]} {
    %c1_i32 = arith.constant 1 : i32
    %0 = arith.muli %arg0, %c1_i32 : i32
    %1 = tpu.assume_multiple %0, 1 : i32
    %c0_i32 = arith.constant 0 : i32
    %2 = tpu.memref_slice %arg1[%1, %c0_i32] : memref<1x2048xf32, #tpu.memory_space<any>> -> memref<1x2048xf32, #tpu.memory_space<any>>
    %c0_i32_0 = arith.constant 0 : i32
    %3 = tpu.memref_slice %arg2[%1, %c0_i32_0] : memref<1x2048xf32, #tpu.memory_space<any>> -> memref<1x2048xf32, #tpu.memory_space<any>>
    tpu.enqueue_dma source(%2 : memref<1x2048xf32, #tpu.memory_space<any>>) target(%3 : memref<1x2048xf32, #tpu.memory_space<any>>) target_semaphore(%arg3 : memref<!tpu.dma_semaphore, #tpu.memory_space<semaphore_mem>>)
    %c0_i32_1 = arith.constant 0 : i32
    %4 = tpu.memref_slice %arg1[%1, %c0_i32_1] : memref<1x2048xf32, #tpu.memory_space<any>> -> memref<1x2048xf32, #tpu.memory_space<any>>
    %c0_i32_2 = arith.constant 0 : i32
    %5 = tpu.memref_slice %arg2[%1, %c0_i32_2] : memref<1x2048xf32, #tpu.memory_space<any>> -> memref<1x2048xf32, #tpu.memory_space<any>>
    tpu.wait_dma2 semaphore(%arg3 : memref<!tpu.dma_semaphore, #tpu.memory_space<semaphore_mem>>) src(%4 : memref<1x2048xf32, #tpu.memory_space<any>>) dst(%5 : memref<1x2048xf32, #tpu.memory_space<any>>)
    return
  }
}

</mosaic_0001>

<bundles_post_ra>
// kernel: tpu_custom_call.1
= control target key start
LH: loop header
LB: loop body
LE: loop exit
PB: predicated region body
PF: predicated region fallthrough
CT: control target
= control target key end

     0   :  { %s39_s6 = smov [#allocation2]   ;;  %s40_s7 = smov [#allocation3]   ;;  %s58_s0 = inlined_call_operand.hbm [shape: f32[1,2048], index: 0, kind: input, shape index: {}]   ;;  %s59_s1 = inlined_call_operand.hbm [shape: f32[1,2048], index: 1, kind: output, shape index: {}]  }
   0x1   :  { %s41_s8 = smov 0  }
   0x2   :  { %23 = dma.general %s58_s0, 256, %s59_s1, %s39_s6, %s40_s7, [#allocation4], %s41_s8, 0  }
   0x3   :  { %37 = dma.done.wait [#allocation2], 256 }
   0x4   :  { %38 = vsyncadd [#allocation2], 4294967040 }
   0x5   :  { %27 = vsyncmov [#allocation2] }
   0x8   :  { %s28_s13 = vpop.sfrf %27 }
   0x9   :  { %p33_p0 = scmp.ne.s32.totalorder %s28_s13, 0 }
   0xb   :  { %32 = shalt.err (%p33_p0)  }

</bundles_post_ra>
